<compile_context>
chip_gen: v7x
topology: tpu7x:2x2x1
jax: 0.10.0
libtpu: 0.0.40
codegen_flags: <defaults>
</compile_context>

<pallas_src>
import jax
import jax.numpy as jnp
from jax import lax
from jax.experimental import pallas as pl
from jax.experimental.pallas import tpu as pltpu

EPS = 1e-6


def _round_up(x, m):
    return (x + m - 1) // m * m


def _vmem_budget_bytes():
    """~85% of this generation's per-core VMEM (v5e/v6e: 128 MiB, v7x: 64 MiB)."""
    try:
        cap = int(pltpu.get_tpu_info().vmem_capacity_bytes)
    except Exception:
        cap = 64 << 20  # conservative fallback (v7x per-TC)
    return int(0.85 * cap)


def _footprint_bytes(tile_m, tile_n, f_pad, x_isize, out_isize, w_isize):
    """Pipeline buffers + in-kernel live intermediates for one grid step."""
    buffers = 2 * tile_m * f_pad * x_isize          # x tiles (double-buffered)
    buffers += 2 * tile_m * tile_n * out_isize      # out tiles
    buffers += 2 * f_pad * tile_n * w_isize         # weight tiles
    buffers += 2 * 8 * tile_n * 4                   # bias tiles (sublane-padded)
    live = tile_m * f_pad * (4 + 4 + 2)             # x(f32), centered(f32), normed(bf16)
    live += tile_m * tile_n * 4                     # y (f32)
    return buffers + live


def _pick_tile_m(m8, cap, fits):
    """Largest row tile <= cap minimizing padding waste, shrunk until it fits VMEM."""
    if m8 <= cap:
        tile_m = m8  # single tile, zero padded rows
    else:
        best, best_pad = cap, _round_up(m8, cap) - m8
        for c in (512, 384, 256, 192, 128, 96, 64):
            if c <= cap:
                pad = _round_up(m8, c) - m8
                if pad < best_pad:
                    best, best_pad = c, pad
        tile_m = best
    while tile_m > 8 and not fits(tile_m):
        tile_m = max(8, (tile_m // 2) // 8 * 8)
    return tile_m


def fold_sublayer_params(a_2, b_2, w, wb, *, weight_dtype=jnp.bfloat16):
    """Fold the LayerNorm affine into the Linear (O(F^2) one-time transform).

    Returns (w_fold: (F_pad, F_pad) weight_dtype, b_fold: (1, F_pad) f32).
    Cache the result per weight update at inference -- do NOT recompute per call.
    """
    F = w.shape[0]
    F_pad = _round_up(F, 128)
    w_fold = a_2[:, None].astype(jnp.float32) * w.astype(jnp.float32)
    b_fold = b_2.astype(jnp.float32) @ w.astype(jnp.float32) + wb.astype(jnp.float32)
    if F_pad != F:
        w_fold = jnp.pad(w_fold, ((0, F_pad - F), (0, F_pad - F)))
        b_fold = jnp.pad(b_fold, (0, F_pad - F))
    return w_fold.astype(weight_dtype), b_fold.reshape(1, F_pad).astype(jnp.float32)


def _make_kernel(valid_f, f_pad, tile_n, approx_recip):
    inv_n = 1.0 / valid_f
    inv_nm1 = 1.0 / max(valid_f - 1, 1)
    need_mask = valid_f != f_pad

    def kernel(x_ref, w_ref, b_ref, o_ref):
        # x_ref: (TILE_M, F_pad)  native dtype, resident across the column axis
        # w_ref: (F_pad, TILE_N)  folded a_2*W
        # b_ref: (1, TILE_N)      folded b_2@W + wb (f32)
        # o_ref: (TILE_M, TILE_N)
        x = x_ref[...].astype(jnp.float32)

        if need_mask:
            lane = lax.broadcasted_iota(jnp.int32, x.shape, 1)
            mask = lane < valid_f
            xm = jnp.where(mask, x, 0.0)
        else:
            xm = x

        # --- LayerNorm statistics (unbiased N-1 std, eps added to std) ---
        # Recomputed per column tile: cheap VPU/XLU work hidden under the MXU matmul.
        mean = jnp.sum(xm, axis=-1, keepdims=True) * inv_n
        centered = xm - mean
        if need_mask:
            centered = jnp.where(mask, centered, 0.0)
        var = jnp.sum(centered * centered, axis=-1, keepdims=True) * inv_nm1
        inv = pl.reciprocal(jnp.sqrt(var) + EPS, approx=approx_recip)   # EUP slot
        normed = (centered * inv).astype(w_ref.dtype)   # affine folded into W'/b'

        # --- sublayer: Linear(size, size) column tile on the MXU, f32 accumulate ---
        y = jnp.dot(normed, w_ref[...], preferred_element_type=jnp.float32)
        y = y + b_ref[...]

        # --- residual add (dropout = identity in eval mode) ---
        if tile_n == f_pad:
            x_res = x
        else:
            j = pl.program_id(1)
            n0 = pl.multiple_of(j * tile_n, 128)
            x_res = x_ref[:, pl.ds(n0, tile_n)].astype(jnp.float32)
        o_ref[...] = (x_res + y).astype(o_ref.dtype)

    return kernel


def sublayer_connection(x, w_fold, b_fold, *, tile_m_cap=512, tile_n_cap=512,
                        approx_recip=True):
    """x: (B, S, F); w_fold/b_fold from fold_sublayer_params.

    Returns x + Linear(LayerNorm(x)) with dropout = identity.
    """
    B, S, F = x.shape
    M = B * S
    F_pad = w_fold.shape[0]

    x_isize = jnp.dtype(x.dtype).itemsize
    w_isize = jnp.dtype(w_fold.dtype).itemsize
    vmem_budget = _vmem_budget_bytes()

    # Output-column tiling: keep the whole folded weight resident when small,
    # otherwise stream (F_pad, TILE_N) column tiles (VMEM independent of F).
    if 2 * F_pad * F_pad * w_isize <= vmem_budget // 2:
        tile_n = F_pad
    elif F_pad % tile_n_cap == 0:
        tile_n = tile_n_cap
    elif F_pad % 256 == 0:
        tile_n = 256
    else:
        tile_n = 128
    n_tiles = F_pad // tile_n

    M8 = _round_up(M, 8)

    def fits(tm):
        return _footprint_bytes(tm, tile_n, F_pad, x_isize, x_isize, w_isize) \
            + (2 << 20) <= vmem_budget

    tile_m = _pick_tile_m(M8, tile_m_cap, fits)
    M_pad = _round_up(M8, tile_m)
    m_tiles = M_pad // tile_m

    # No wrapper-side HBM passes unless padding is actually needed.
    x2d = x.reshape(M, F)
    need_pad = (M_pad != M) or (F_pad != F)
    if need_pad:
        x2d = jnp.pad(x2d, ((0, M_pad - M), (0, F_pad - F)))

    footprint = _footprint_bytes(tile_m, tile_n, F_pad, x_isize, x_isize, w_isize)
    vmem_limit = int(min(max(footprint * 5 // 4 + (4 << 20), 32 << 20), vmem_budget))

    out_pad = pl.pallas_call(
        _make_kernel(F, F_pad, tile_n, approx_recip),
        out_shape=jax.ShapeDtypeStruct((M_pad, F_pad), x.dtype),
        grid=(m_tiles, n_tiles),
        in_specs=[
            pl.BlockSpec((tile_m, F_pad), lambda i, j: (i, 0)),   # x: resident over j
            pl.BlockSpec((F_pad, tile_n), lambda i, j: (0, j)),   # folded weight tile
            pl.BlockSpec((1, tile_n), lambda i, j: (0, j)),       # folded bias tile
        ],
        out_specs=pl.BlockSpec((tile_m, tile_n), lambda i, j: (i, j)),
        compiler_params=pltpu.CompilerParams(
            dimension_semantics=("parallel", "parallel"),
            vmem_limit_bytes=vmem_limit,
        ),
    )(x2d, w_fold, b_fold)

    if need_pad:
        out_pad = out_pad[:M, :F]
    return out_pad.reshape(B, S, F)


def _reference(x, a_2, b_2, w, wb):
    mean = jnp.mean(x, axis=-1, keepdims=True)
    centered = x - mean
    var = jnp.sum(centered * centered, axis=-1, keepdims=True) / (x.shape[-1] - 1)
    std = jnp.sqrt(var)
    normed = a_2 * centered / (std + EPS) + b_2
    y = normed @ w + wb
    return x + y


if __name__ == "__main__":
    key = jax.random.PRNGKey(0)
    B, S, F = 2, 8, 32

    kx, kw, kwb = jax.random.split(key, 3)
    x = jax.random.normal(kx, (B, S, F), dtype=jnp.float32)

    # Deterministic parameter init (shapes match the module's __init__):
    a_2 = jnp.ones((F,), dtype=jnp.float32)                       # LayerNorm gain
    b_2 = jnp.zeros((F,), dtype=jnp.float32)                      # LayerNorm bias
    w = jax.random.normal(kw, (F, F), dtype=jnp.float32) * 0.05   # sublayer Linear weight
    wb = jax.random.normal(kwb, (F,), dtype=jnp.float32) * 0.01   # sublayer Linear bias

    # Fold once per weight update (cache at inference), then run the fused kernel.
    w_fold, b_fold = fold_sublayer_params(a_2, b_2, w, wb)
    out = sublayer_connection(x, w_fold, b_fold)
    out = jax.block_until_ready(out)

    ref = _reference(x, a_2, b_2, w, wb)
    assert out.shape == (B, S, F)
    # Tolerance accounts for bf16 MXU operands + approximate EUP reciprocal
    # (use approx_recip=False / weight_dtype=jnp.float32 for an exact fallback).
    assert jnp.allclose(out, ref, atol=2e-2, rtol=2e-2), float(jnp.max(jnp.abs(out - ref)))

    print("KERNEL_OK")
</pallas_src>

<mosaic_0001>
module attributes {stable_mosaic.version = 11 : i64} {
  func.func @kernel(%arg0: i32, %arg1: i32, %arg2: memref<16x128xf32, #tpu.memory_space<vmem>>, %arg3: memref<128x128xbf16, #tpu.memory_space<vmem>>, %arg4: memref<1x128xf32, #tpu.memory_space<vmem>>, %arg5: memref<16x128xf32, #tpu.memory_space<vmem>>) attributes {dimension_semantics = [#tpu.dimension_semantics<parallel>, #tpu.dimension_semantics<parallel>], iteration_bounds = array<i64: 1, 1>, scalar_prefetch = 0 : i64, scratch_operands = 0 : i64, tpu.core_type = #tpu.core_type<tc>, window_params = [{transform_indices = @transform_0, window_bounds = array<i64: 16, 128>}, {transform_indices = @transform_1, window_bounds = array<i64: 128, 128>}, {transform_indices = @transform_2, window_bounds = array<i64: 1, 128>}, {transform_indices = @transform_3, window_bounds = array<i64: 16, 128>}]} {
    %c0 = arith.constant 0 : index
    %c0_0 = arith.constant 0 : index
    %0 = vector.load %arg2[%c0, %c0_0] : memref<16x128xf32, #tpu.memory_space<vmem>>, vector<16x128xf32>
    %1 = tpu.iota {dimensions = array<i32: 1>} : vector<16x128xi32>
    %c32_i32 = arith.constant 32 : i32
    %2 = vector.broadcast %c32_i32 : i32 to vector<16x128xi32>
    %3 = arith.cmpi slt, %1, %2 : vector<16x128xi32>
    %cst = arith.constant 0.000000e+00 : f32
    %4 = vector.broadcast %cst : f32 to vector<16x128xf32>
    %5 = arith.select %3, %0, %4 : vector<16x128xi1>, vector<16x128xf32>
    %cst_1 = arith.constant dense<0.000000e+00> : vector<16xf32>
    %6 = vector.multi_reduction <add>, %5, %cst_1 [1] : vector<16x128xf32> to vector<16xf32>
    %7 = vector.shape_cast %6 : vector<16xf32> to vector<16x1xf32>
    %cst_2 = arith.constant 3.125000e-02 : f32
    %8 = vector.broadcast %cst_2 : f32 to vector<16x1xf32>
    %9 = arith.mulf %7, %8 : vector<16x1xf32>
    %10 = vector.broadcast %9 : vector<16x1xf32> to vector<16x128xf32>
    %11 = arith.subf %5, %10 : vector<16x128xf32>
    %cst_3 = arith.constant 0.000000e+00 : f32
    %12 = vector.broadcast %cst_3 : f32 to vector<16x128xf32>
    %13 = arith.select %3, %11, %12 : vector<16x128xi1>, vector<16x128xf32>
    %14 = arith.mulf %13, %13 : vector<16x128xf32>
    %cst_4 = arith.constant dense<0.000000e+00> : vector<16xf32>
    %15 = vector.multi_reduction <add>, %14, %cst_4 [1] : vector<16x128xf32> to vector<16xf32>
    %16 = vector.shape_cast %15 : vector<16xf32> to vector<16x1xf32>
    %cst_5 = arith.constant 0.0322580636 : f32
    %17 = vector.broadcast %cst_5 : f32 to vector<16x1xf32>
    %18 = arith.mulf %16, %17 : vector<16x1xf32>
    %19 = math.sqrt %18 : vector<16x1xf32>
    %cst_6 = arith.constant 9.99999997E-7 : f32
    %20 = vector.broadcast %cst_6 : f32 to vector<16x1xf32>
    %21 = arith.addf %19, %20 : vector<16x1xf32>
    %22 = tpu.reciprocal %21 {approx = true} : vector<16x1xf32> -> vector<16x1xf32>
    %23 = vector.broadcast %22 : vector<16x1xf32> to vector<16x128xf32>
    %24 = arith.mulf %13, %23 : vector<16x128xf32>
    %25 = arith.truncf %24 : vector<16x128xf32> to vector<16x128xbf16>
    %c0_7 = arith.constant 0 : index
    %c0_8 = arith.constant 0 : index
    %26 = vector.load %arg3[%c0_7, %c0_8] : memref<128x128xbf16, #tpu.memory_space<vmem>>, vector<128x128xbf16>
    %cst_9 = arith.constant dense<0.000000e+00> : vector<16x128xf32>
    %27 = tpu.matmul %25, %26, %cst_9 {dimension_numbers = #tpu.dot_dimension_numbers<[1], [0], [0], [1], [0, 0, 1, 1], [], []>} : vector<16x128xbf16>, vector<128x128xbf16>, vector<16x128xf32> -> vector<16x128xf32>
    %c0_10 = arith.constant 0 : index
    %c0_11 = arith.constant 0 : index
    %28 = vector.load %arg4[%c0_10, %c0_11] : memref<1x128xf32, #tpu.memory_space<vmem>>, vector<1x128xf32>
    %29 = vector.broadcast %28 : vector<1x128xf32> to vector<16x128xf32>
    %30 = arith.addf %27, %29 : vector<16x128xf32>
    %31 = arith.addf %0, %30 : vector<16x128xf32>
    %c0_12 = arith.constant 0 : index
    %c0_13 = arith.constant 0 : index
    %32 = vector.load %arg5[%c0_12, %c0_13] : memref<16x128xf32, #tpu.memory_space<vmem>>, vector<16x128xf32>
    tpu.vector_store %arg5[%c0_12, %c0_13], %31 {strides = array<i32>} : memref<16x128xf32, #tpu.memory_space<vmem>>, vector<16x128xf32>,
    return
  }
  func.func @transform_0(%arg0: i32, %arg1: i32) -> (i32, i32) {
    %c0_i32 = arith.constant 0 : i32
    %c0_i32_0 = arith.constant 0 : i32
    return %arg0, %c0_i32 : i32, i32
  }
  func.func @transform_1(%arg0: i32, %arg1: i32) -> (i32, i32) {
    %c0_i32 = arith.constant 0 : i32
    %c0_i32_0 = arith.constant 0 : i32
    return %c0_i32, %arg1 : i32, i32
  }
  func.func @transform_2(%arg0: i32, %arg1: i32) -> (i32, i32) {
    %c0_i32 = arith.constant 0 : i32
    %c0_i32_0 = arith.constant 0 : i32
    return %c0_i32, %arg1 : i32, i32
  }
  func.func @transform_3(%arg0: i32, %arg1: i32) -> (i32, i32) {
    %c0_i32 = arith.constant 0 : i32
    return %arg0, %arg1 : i32, i32
  }
}

</mosaic_0001>

<bundles_post_ra>
// kernel: tpu_custom_call.1
= control target key start
LH: loop header
LB: loop body
LE: loop exit
PB: predicated region body
PF: predicated region fallthrough
CT: control target
= control target key end

     0   :  { %8 = vsyncpa [#allocation3], 0  ;;  %s445_s0 = inlined_call_operand.hbm [shape: f32[16,128], index: 0, kind: input, shape index: {}]   ;;  %s446_s1 = inlined_call_operand.hbm [shape: bf16[128,128], index: 1, kind: input, shape index: {}]   ;;  %s447_s2 = inlined_call_operand.vmem [shape: f32[1,128], index: 2, kind: input, shape index: {}]   ;;  %s448_s3 = inlined_call_operand.hbm [shape: f32[16,128], index: 3, kind: output, shape index: {}]  }
   0x1   :  { %9 = vsyncpa [#allocation6], 0 }
   0x2   :  { %10 = vsyncpa [#allocation4], 0  ;;  %s359_s12 = smov [#allocation2]   ;;  %s287_s16 = scalar_lea.hbm %s445_s0, 256 }
   0x3   :  { %s16_s13 = sshll.u32 %s359_s12, 4  ;;  %p288_p0 = scmp.ne.s32.totalorder %s445_s0, %s287_s16  ;;  %s17_s13 = int_to_ptr.vmem [resolvable:$true] %s16_s13 }
   0x4   :  { %p291_p1 = scmp.lt.u32.totalorder %s287_s16, %s445_s0 }
   0x6   :  { %p293_p2 = pnand %p291_p1, %p288_p0 }
   0x8   :  { %296 = shalt.err (!%p293_p2)
}
   0x9   :  { %s297_s21 = scalar_lea.vmem %s17_s13, 256  ;;  %p302_p4 = scmp.lt.s32.totalorder %s17_s13, %s17_s13 }
   0xa   :  { %p298_p3 = scmp.ne.s32.totalorder %s17_s13, %s297_s21  ;;  %p303_p5 = scmp.lt.s32.totalorder %s297_s21, %s297_s21 }
   0xc   :  { %p304_p6 = por %p303_p5, %p302_p4 }
   0xe   :  { %p305_p7 = pnand %p304_p6, %p298_p3 }
  0x10   :  { %308 = shalt.err (!%p305_p7)
}
  0x11   :  { %s360_s22 = smov 128   ;;  %s361_s23 = smov 8  }
  0x12   :  { %22 = dma.hbm_to_vmem [thread:$0]  %s445_s0, 256, %s17_s13, [#allocation3], %s360_s22, %s360_s22, %s361_s23  }
  0x13   :  { %s362_s26 = smov [#allocation5]   ;;  %s309_s30 = scalar_lea.hbm %s446_s1, 1024 }
  0x14   :  { %s28_s27 = sshll.u32 %s362_s26, 4  ;;  %p310_p8 = scmp.ne.s32.totalorder %s446_s1, %s309_s30  ;;  %s29_s27 = int_to_ptr.vmem [resolvable:$true] %s28_s27 }
  0x15   :  { %p313_p9 = scmp.lt.u32.totalorder %s309_s30, %s446_s1 }
  0x17   :  { %p315_p10 = pnand %p313_p9, %p310_p8 }
  0x19   :  { %318 = shalt.err (!%p315_p10)
}
  0x1a   :  { %s319_s8 = scalar_lea.vmem %s29_s27, 1024  ;;  %p324_p12 = scmp.lt.s32.totalorder %s29_s27, %s29_s27 }
  0x1b   :  { %p320_p11 = scmp.ne.s32.totalorder %s29_s27, %s319_s8  ;;  %p325_p13 = scmp.lt.s32.totalorder %s319_s8, %s319_s8 }
  0x1d   :  { %p326_p0 = por %p325_p13, %p324_p12 }
  0x1f   :  { %p327_p1 = pnand %p326_p0, %p320_p11 }
  0x21   :  { %330 = shalt.err (!%p327_p1)
}
  0x22   :  { %s363_s0 = smov 64   ;;  %s364_s9 = smov 4  }
  0x23   :  { %34 = dma.hbm_to_vmem [thread:$0]  %s446_s1, 1024, %s29_s27, [#allocation6], %s363_s0, %s363_s0, %s364_s9  }
  0x24   :  { %353 = dma.done.wait [#allocation3], 256  }
  0x25   :  { %354 = vsyncadd [#allocation3], 4294967040 }
  0x26   :  { %355 = dma.done.wait [#allocation6], 1024  }
  0x27   :  { %356 = vsyncadd [#allocation6], 4294966272  ;;  %v46_v0 = vlaneseq  ;;  %v415_v2 = vld [vmem:[#allocation2] sm:$0xff]  ;;  %v417_v3 = vld [vmem:[#allocation2 + $0x8] sm:$0xff]  ;;  %v365_v17 = vmov 0.0   ;;  %vm366_vm1 = vmmov 0  }
  0x28   :  { %v271_v16 = vld [vmem:[#allocation5] sm:$0xff]   ;;  %242 = vmatprep.subr.bf16.mxu0 %v365_v17  ;;  %v272_v18 = vld [vmem:[#allocation5 + $0x8] sm:$0xff]   ;;  %v273_v19 = vld [vmem:[#allocation5 + $0x10] sm:$0xff]   ;;  %258 = vmatprep.mubr.msk.bf16.mxu0 %vm366_vm1, %v365_v17  ;;  %s367_s13 = smov [#allocation7]  }
  0x29   :  { %v47_v1 = vand.u32 127, %v46_v0  ;;  %243 = vmatpush3.bf16.msra.mxu0 %v271_v16  ;;  %v274_v20 = vld [vmem:[#allocation5 + $0x18] sm:$0xff]   ;;  %v275_v21 = vld [vmem:[#allocation5 + $0x20] sm:$0xff]   ;;  %v276_v22 = vld [vmem:[#allocation5 + $0x28] sm:$0xff]   ;;  %s211_s14 = sshll.u32 %s367_s13, 4  ;;  %s212_s14 = int_to_ptr.vmem [resolvable:$true] %s211_s14 }
  0x2a   :  { %244 = vmatprep.subr.bf16.mxu0 %v365_v17  ;;  %v277_v23 = vld [vmem:[#allocation5 + $0x30] sm:$0xff]   ;;  %v278_v24 = vld [vmem:[#allocation5 + $0x38] sm:$0xff]   ;;  %s331_s15 = scalar_lea.vmem %s212_s14, 256  ;;  %p336_p3 = scmp.lt.s32.totalorder %s212_s14, %s212_s14 }
  0x2b   :  { %vm48_vm0 = vcmp.lt.s32.totalorder %v47_v1, 32  ;;  %v224_v46 = vld [vmem:[%s447_s2] ss:$0 sm:$0xff]  ;;  %p332_p2 = scmp.ne.s32.totalorder %s212_s14, %s331_s15  ;;  %p337_p4 = scmp.lt.s32.totalorder %s331_s15, %s331_s15 }
  0x2c   :  { %v49_v4 = vsel %vm48_vm0, %v415_v2, 0.0  ;;  %v50_v5 = vsel %vm48_vm0, %v417_v3, 0.0 }
  0x2d   :  { %51 = vadd.xlane.f32.xlu0 %v49_v4  ;;  %245 = vmatpush3.bf16.msra.mxu0 %v272_v18  ;;  %p338_p5 = por %p337_p4, %p336_p3 }
  0x2e   :  { %246 = vmatprep.subr.bf16.mxu0 %v365_v17 }
  0x2f   :  { %p339_p6 = pnand %p338_p5, %p332_p2 }
  0x31   :  { %53 = vadd.xlane.f32.xlu0 %v50_v5  ;;  %247 = vmatpush3.bf16.msra.mxu0 %v273_v19 }
  0x32   :  { %248 = vmatprep.subr.bf16.mxu0 %v365_v17 }
  0x35   :  { %249 = vmatpush3.bf16.msra.mxu0 %v274_v20 }
  0x36   :  { %250 = vmatprep.subr.bf16.mxu0 %v365_v17 }
  0x39   :  { %251 = vmatpush3.bf16.msra.mxu0 %v275_v21 }
  0x3a   :  { %252 = vmatprep.subr.bf16.mxu0 %v365_v17 }
  0x3d   :  { %253 = vmatpush3.bf16.msra.mxu0 %v276_v22 }
  0x3e   :  { %254 = vmatprep.subr.bf16.mxu0 %v365_v17 }
  0x41   :  { %255 = vmatpush3.bf16.msra.mxu0 %v277_v23 }
  0x42   :  { %256 = vmatprep.subr.bf16.mxu0 %v365_v17 }
  0x45   :  { %257 = vmatpush3.bf16.msra.mxu0 %v278_v24 }
  0xba   :  { %v52_v6 = vpop.xlane.xlu0 %51 }
  0xbb   :  { %v55_v7 = vmul.f32 0.03125, %v52_v6 }
  0xbd   :  { %v57_v8 = vsub.f32 %v49_v4, %v55_v7 }
  0xbe   :  { %v54_v9 = vpop.xlane.xlu0 %53 }
  0xbf   :  { %v56_v10 = vmul.f32 0.03125, %v54_v9  ;;  %v59_v11 = vsel %vm48_vm0, %v57_v8, 0.0 }
  0xc0   :  { %v61_v12 = vmul.f32 %v59_v11, %v59_v11 }
  0xc1   :  { %v58_v13 = vsub.f32 %v50_v5, %v56_v10 }
  0xc2   :  { %63 = vadd.xlane.f32.xlu1 %v61_v12 }
  0xc3   :  { %v60_v14 = vsel %vm48_vm0, %v58_v13, 0.0 }
  0xc4   :  { %v62_v15 = vmul.f32 %v60_v14, %v60_v14 }
  0xc6   :  { %65 = vadd.xlane.f32.xlu1 %v62_v15 }
 0x14f   :  { %v64_v25 = vpop.xlane.xlu1 %63 }
 0x150   :  { %v67_v26 = vmul.f32 0.032258064, %v64_v25 }
 0x152   :  { %279 = vrsqrt.f32 %v67_v26  ;;  %vm71_vm2 = vcmp.eq.f32.partialorder %v67_v26, inf  ;;  %v74_v31 = vand.u32 2147483648, %v67_v26  ;;  %vm73_vm3 = vcmp.eq.f32.partialorder %v67_v26, 0.0 }
 0x153   :  { %v66_v27 = vpop.xlane.xlu1 %65 }
 0x154   :  { %v68_v28 = vmul.f32 0.032258064, %v66_v27 }
 0x156   :  { %281 = vrsqrt.f32 %v68_v28  ;;  %vm78_vm4 = vcmp.eq.f32.partialorder %v68_v28, inf  ;;  %v81_v37 = vand.u32 2147483648, %v68_v28  ;;  %vm80_vm5 = vcmp.eq.f32.partialorder %v68_v28, 0.0 }
 0x15c   :  { %v280_v29 = vpop.eup %279 }
 0x15d   :  { %v70_v30 = vmul.f32 %v280_v29, %v67_v26 }
 0x15f   :  { %v72_v32 = vsel %vm71_vm2, %v67_v26, %v70_v30 }
 0x160   :  { %v282_v33 = vpop.eup %281  ;;  %v75_v34 = vsel %vm73_vm3, %v74_v31, %v72_v32 }
 0x161   :  { %v77_v35 = vmul.f32 %v282_v33, %v68_v28  ;;  %v83_v36 = vadd.f32 1e-06, %v75_v34 }
 0x163   :  { %v79_v38 = vsel %vm78_vm4, %v68_v28, %v77_v35  ;;  %283 = vrcp.f32 %v83_v36 }
 0x164   :  { %v82_v39 = vsel %vm80_vm5, %v81_v37, %v79_v38 }
 0x165   :  { %v84_v40 = vadd.f32 1e-06, %v82_v39 }
 0x167   :  { %285 = vrcp.f32 %v84_v40 }
 0x16d   :  { %v284_v41 = vpop.eup %283 }
 0x16e   :  { %v87_v43 = vmul.f32 %v284_v41, %v59_v11 }
 0x171   :  { %v286_v42 = vpop.eup %285 }
 0x172   :  { %v88_v44 = vmul.f32 %v286_v42, %v60_v14 }
 0x174   :  { %v89_v45 = vpack.c.bf16 %v88_v44, %v87_v43 }
 0x176   :  { %259 = vmatmul.mubr.bf16.vlgmr.msra.gmra.mrb[0].mxu0 %v89_v45 }
 0x249   :  { %v195_v47 = vpop.f32.mrb[0].mxu0 }
 0x24a   :  { %v196_v48 = vadd.f32 %v224_v46, %v195_v47  ;;  %v260_v49 = vpop.f32.mrb[1].mxu0 }
 0x24b   :  { %v198_v50 = vpop.f32.mrb[2].mxu0 }
 0x24c   :  { %v202_v51 = vadd.f32 %v196_v48, %v415_v2  ;;  %v199_v52 = vadd.f32 %v224_v46, %v198_v50  ;;  %v261_v53 = vpop.f32.mrb[3].mxu0 }
 0x24e   :  { %204 = vst [vmem:[#allocation7] sm:$0xff] %v202_v51  ;;  %v203_v54 = vadd.f32 %v199_v52, %v417_v3 }
 0x250   :  { %205 = vst [vmem:[#allocation7 + $0x8] sm:$0xff] %v203_v54 }
 0x251   :  { %342 = shalt.err (!%p339_p6)
}
 0x252   :  { %s343_s17 = scalar_lea.hbm %s448_s3, 256 }
 0x253   :  { %p344_p7 = scmp.ne.s32.totalorder %s448_s3, %s343_s17  ;;  %p347_p8 = scmp.lt.u32.totalorder %s343_s17, %s448_s3 }
 0x255   :  { %p349_p9 = pnand %p347_p8, %p344_p7 }
 0x257   :  { %352 = shalt.err (!%p349_p9)
}
 0x258   :  { %217 = dma.vmem_to_hbm [thread:$0]  %s212_s14, 256, %s448_s3, [#allocation4], %s360_s22, %s360_s22, %s361_s23  }
 0x259   :  { %357 = dma.done.wait [#allocation4], 256  }
 0x25a   :  { %358 = vsyncadd [#allocation4], 4294967040 }
 0x25b   :  { %221 = vsyncpa [#allocation3], 1 }
 0x25c   :  { %222 = vsyncpa [#allocation6], 1 }
 0x25d   :  { %223 = vsyncpa [#allocation4], 1 }

</bundles_post_ra>
